<compile_context>
chip_gen: v7x
topology: tpu7x:2x2x1
jax: 0.10.0
libtpu: 0.0.40
codegen_flags: <defaults>
</compile_context>

<pallas_src>
import math

import jax
import jax.numpy as jnp
from jax.experimental import pallas as pl
from jax.experimental.pallas import tpu as pltpu


# Budget (bytes) for the VMEM-resident fused paths.  Conservative estimate of
# 16 bytes/element (f32 in + f32 out, double-buffered) is compared against it.
_FUSED_GROUP_BYTES = 8 * 1024 * 1024    # all-tensors-in-one-call path
_FUSED_SINGLE_BYTES = 8 * 1024 * 1024   # per-tensor single-block path


# ---------------------------------------------------------------------------
# Fused kernel: one invocation normalizes ALL n tensors (each is a full-array
# VMEM block).  min/max + normalize in a single pass per tensor.
# ---------------------------------------------------------------------------
def _make_fused_kernel(n):
    def kernel(*refs):
        in_refs = refs[:n]
        out_refs = refs[n:]
        for x_ref, o_ref in zip(in_refs, out_refs):
            x = x_ref[...].astype(jnp.float32)          # cast on the VPU
            mn = jnp.min(x)
            mx = jnp.max(x)
            inv = 1.0 / (mx - mn + jnp.float32(1e-6))   # one scalar divide
            o_ref[...] = (x - mn) * inv
    return kernel


# ---------------------------------------------------------------------------
# Fallback kernels for large tensors: two-pass tiled min/max + normalize.
# ---------------------------------------------------------------------------
def _minmax_tiled_kernel(x_ref, mn_ref, mx_ref, mn_s, mx_s):
    i = pl.program_id(0)
    x = x_ref[...].astype(jnp.float32)
    tmin = jnp.min(x)
    tmax = jnp.max(x)

    @pl.when(i == 0)
    def _():
        mn_s[0, 0] = tmin
        mx_s[0, 0] = tmax

    @pl.when(i > 0)
    def _():
        mn_s[0, 0] = jnp.minimum(mn_s[0, 0], tmin)
        mx_s[0, 0] = jnp.maximum(mx_s[0, 0], tmax)

    @pl.when(i == pl.num_programs(0) - 1)
    def _():
        mn_ref[0, 0] = mn_s[0, 0]
        mx_ref[0, 0] = mx_s[0, 0]


def _norm_tiled_kernel(x_ref, stats_ref, o_ref):
    mn = stats_ref[0]
    mx = stats_ref[1]
    inv = 1.0 / (mx - mn + jnp.float32(1e-6))
    o_ref[...] = (x_ref[...].astype(jnp.float32) - mn) * inv


# ---------------------------------------------------------------------------
# Layout helpers
# ---------------------------------------------------------------------------
def _lane_dense_slab(shape):
    """Pick a (rows, cols) 2-D slab; prefer a lane-dense cols == 128."""
    total = math.prod(shape)
    if total % 128 == 0:
        return total // 128, 128
    return total // shape[-1], shape[-1]


def _pick_row_tile(rows):
    for t in (2048, 1024, 512, 256, 128, 64, 32, 16, 8):
        if rows % t == 0:
            return t
    return rows  # full extent is always legal


# ---------------------------------------------------------------------------
# Wrappers
# ---------------------------------------------------------------------------
def _normalize_fused(arrs):
    """Normalize a list of tensors (any shapes/dtypes) in ONE pallas_call."""
    n = len(arrs)
    shapes = [a.shape for a in arrs]
    slabs = []
    in_specs = []
    out_specs = []
    out_shapes = []
    for a in arrs:
        rows, cols = _lane_dense_slab(a.shape)
        slabs.append(a.reshape(rows, cols))
        in_specs.append(pl.BlockSpec((rows, cols), lambda i: (0, 0)))
        out_specs.append(pl.BlockSpec((rows, cols), lambda i: (0, 0)))
        out_shapes.append(jax.ShapeDtypeStruct((rows, cols), jnp.float32))

    outs = pl.pallas_call(
        _make_fused_kernel(n),
        out_shape=tuple(out_shapes),
        grid=(1,),
        in_specs=in_specs,
        out_specs=tuple(out_specs),
        compiler_params=pltpu.CompilerParams(
            dimension_semantics=("arbitrary",)),
    )(*slabs)

    if n == 1:
        outs = (outs,) if not isinstance(outs, (tuple, list)) else outs
    return [o.reshape(s) for o, s in zip(outs, shapes)]


def _normalize_single_tiled(img):
    """Two-pass tiled path for tensors too large for one VMEM block."""
    shape = img.shape
    rows, cols = _lane_dense_slab(shape)
    x2d = img.reshape(rows, cols)
    tr = _pick_row_tile(rows)
    grid = (rows // tr,)

    # pass 1: global min / max (accumulated in VMEM scratch, written once)
    mn, mx = pl.pallas_call(
        _minmax_tiled_kernel,
        out_shape=(jax.ShapeDtypeStruct((1, 1), jnp.float32),
                   jax.ShapeDtypeStruct((1, 1), jnp.float32)),
        grid_spec=pltpu.PrefetchScalarGridSpec(
            num_scalar_prefetch=0,
            grid=grid,
            in_specs=[pl.BlockSpec((tr, cols), lambda i: (i, 0))],
            out_specs=(pl.BlockSpec((1, 1), lambda i: (0, 0)),
                       pl.BlockSpec((1, 1), lambda i: (0, 0))),
            scratch_shapes=[pltpu.VMEM((1, 1), jnp.float32),
                            pltpu.VMEM((1, 1), jnp.float32)]),
        compiler_params=pltpu.CompilerParams(
            dimension_semantics=("arbitrary",)),
    )(x2d)

    stats = jnp.concatenate([mn.reshape(1), mx.reshape(1)], axis=0)

    # pass 2: tiled normalize, scalars delivered via SMEM
    y2d = pl.pallas_call(
        _norm_tiled_kernel,
        out_shape=jax.ShapeDtypeStruct((rows, cols), jnp.float32),
        grid_spec=pltpu.PrefetchScalarGridSpec(
            num_scalar_prefetch=0,
            grid=grid,
            in_specs=[pl.BlockSpec((tr, cols), lambda i: (i, 0)),
                      pl.BlockSpec(memory_space=pltpu.MemorySpace.SMEM)],
            out_specs=pl.BlockSpec((tr, cols), lambda i: (i, 0)),
        ),
        compiler_params=pltpu.CompilerParams(
            dimension_semantics=("parallel",)),
    )(x2d, stats)

    return y2d.reshape(shape)


def visualize_train_forward(originals, inputs, outputs, ori_labels, labels):
    """Pallas equivalent of Visualize_train.forward.

    Returns the five min-max-normalized float32 tensors (the images that would
    be passed to make_grid / writer.add_image).
    """
    tensors = {
        "inputs_original": originals,
        "inputs_train":    inputs,
        "outputs_train":   outputs,      # .float() happens inside the kernel
        "labels_original": ori_labels,   # .float() happens inside the kernel
        "labels_train":    labels,       # .float() happens inside the kernel
    }
    names = list(tensors.keys())
    arrs = [tensors[n] for n in names]

    total_cost = sum(16 * math.prod(a.shape) for a in arrs)
    if total_cost <= _FUSED_GROUP_BYTES:
        # All five tensors in a single fused pallas_call.
        outs = _normalize_fused(arrs)
        return dict(zip(names, outs))

    # Per-tensor fallback.
    results = {}
    for name, a in tensors.items():
        if 16 * math.prod(a.shape) <= _FUSED_SINGLE_BYTES:
            results[name] = _normalize_fused([a])[0]
        else:
            results[name] = _normalize_single_tiled(a)
    return results


if __name__ == "__main__":
    key = jax.random.PRNGKey(0)
    k0, k1, k2, k3, k4 = jax.random.split(key, 5)

    # NCHW images, small shapes
    originals  = jax.random.normal(k0, (2, 4, 16, 16), dtype=jnp.float32)
    inputs     = jax.random.normal(k1, (2, 4, 16, 16), dtype=jnp.float32)
    # segmentation logits / predictions (cast to float inside the kernel)
    outputs    = jax.random.uniform(k2, (2, 4, 16, 16), dtype=jnp.float32)
    # integer label maps (N, 1, H, W), cast to float inside the kernel
    ori_labels = jax.random.randint(k3, (2, 1, 16, 16), 0, 4, dtype=jnp.int32)
    labels     = jax.random.randint(k4, (2, 1, 16, 16), 0, 4, dtype=jnp.int32)

    out = visualize_train_forward(originals, inputs, outputs, ori_labels, labels)
    out = jax.block_until_ready(out)

    # lightweight sanity check vs pure-JAX reference
    def ref_norm(x):
        x = x.astype(jnp.float32)
        return (x - x.min()) / (x.max() - x.min() + 1e-6)

    ok = True
    for name, src in (("inputs_original", originals),
                      ("inputs_train", inputs),
                      ("outputs_train", outputs),
                      ("labels_original", ori_labels),
                      ("labels_train", labels)):
        ref = ref_norm(src)
        if not jnp.allclose(out[name], ref, atol=1e-5, rtol=1e-5):
            ok = False
            print(f"MISMATCH in {name}")

    if ok:
        print("KERNEL_OK")
</pallas_src>

<mosaic_0001>
module attributes {stable_mosaic.version = 11 : i64} {
  func.func @kernel(%arg0: i32, %arg1: memref<16x128xf32, #tpu.memory_space<vmem>>, %arg2: memref<16x128xf32, #tpu.memory_space<vmem>>, %arg3: memref<16x128xf32, #tpu.memory_space<vmem>>, %arg4: memref<4x128xi32, #tpu.memory_space<vmem>>, %arg5: memref<4x128xi32, #tpu.memory_space<vmem>>, %arg6: memref<16x128xf32, #tpu.memory_space<vmem>>, %arg7: memref<16x128xf32, #tpu.memory_space<vmem>>, %arg8: memref<16x128xf32, #tpu.memory_space<vmem>>, %arg9: memref<4x128xf32, #tpu.memory_space<vmem>>, %arg10: memref<4x128xf32, #tpu.memory_space<vmem>>) attributes {dimension_semantics = [#tpu.dimension_semantics<arbitrary>], iteration_bounds = array<i64: 1>, scalar_prefetch = 0 : i64, scratch_operands = 0 : i64, tpu.core_type = #tpu.core_type<tc>, window_params = [{pipeline_mode = #tpu.pipeline_mode<synchronous>, transform_indices = @transform_0, window_bounds = array<i64: 16, 128>}, {pipeline_mode = #tpu.pipeline_mode<synchronous>, transform_indices = @transform_1, window_bounds = array<i64: 16, 128>}, {pipeline_mode = #tpu.pipeline_mode<synchronous>, transform_indices = @transform_2, window_bounds = array<i64: 16, 128>}, {pipeline_mode = #tpu.pipeline_mode<synchronous>, transform_indices = @transform_3, window_bounds = array<i64: 4, 128>}, {pipeline_mode = #tpu.pipeline_mode<synchronous>, transform_indices = @transform_4, window_bounds = array<i64: 4, 128>}, {pipeline_mode = #tpu.pipeline_mode<synchronous>, transform_indices = @transform_5, window_bounds = array<i64: 16, 128>}, {pipeline_mode = #tpu.pipeline_mode<synchronous>, transform_indices = @transform_6, window_bounds = array<i64: 16, 128>}, {pipeline_mode = #tpu.pipeline_mode<synchronous>, transform_indices = @transform_7, window_bounds = array<i64: 16, 128>}, {pipeline_mode = #tpu.pipeline_mode<synchronous>, transform_indices = @transform_8, window_bounds = array<i64: 4, 128>}, {pipeline_mode = #tpu.pipeline_mode<synchronous>, transform_indices = @transform_9, window_bounds = array<i64: 4, 128>}]} {
    %c0 = arith.constant 0 : index
    %c0_0 = arith.constant 0 : index
    %0 = vector.load %arg1[%c0, %c0_0] : memref<16x128xf32, #tpu.memory_space<vmem>>, vector<16x128xf32>
    %1 = vector.shape_cast %0 : vector<16x128xf32> to vector<1x16x128xf32>
    %cst = arith.constant dense<0x7F800000> : vector<1xf32>
    %2 = vector.multi_reduction <minimumf>, %1, %cst [1, 2] : vector<1x16x128xf32> to vector<1xf32>
    %3 = vector.shape_cast %2 : vector<1xf32> to vector<1x1x1xf32>
    %4 = vector.extract %3[0, 0, 0] : f32 from vector<1x1x1xf32>
    %5 = vector.shape_cast %0 : vector<16x128xf32> to vector<1x16x128xf32>
    %cst_1 = arith.constant dense<0xFF800000> : vector<1xf32>
    %6 = vector.multi_reduction <maximumf>, %5, %cst_1 [1, 2] : vector<1x16x128xf32> to vector<1xf32>
    %7 = vector.shape_cast %6 : vector<1xf32> to vector<1x1x1xf32>
    %8 = vector.extract %7[0, 0, 0] : f32 from vector<1x1x1xf32>
    %9 = arith.subf %8, %4 : f32
    %cst_2 = arith.constant 9.99999997E-7 : f32
    %10 = arith.addf %9, %cst_2 : f32
    %cst_3 = arith.constant 1.000000e+00 : f32
    %11 = arith.divf %cst_3, %10 : f32
    %12 = vector.broadcast %4 : f32 to vector<16x128xf32>
    %13 = arith.subf %0, %12 : vector<16x128xf32>
    %14 = vector.broadcast %11 : f32 to vector<16x128xf32>
    %15 = arith.mulf %13, %14 : vector<16x128xf32>
    %c0_4 = arith.constant 0 : index
    %c0_5 = arith.constant 0 : index
    %16 = vector.load %arg6[%c0_4, %c0_5] : memref<16x128xf32, #tpu.memory_space<vmem>>, vector<16x128xf32>
    tpu.vector_store %arg6[%c0_4, %c0_5], %15 {strides = array<i32>} : memref<16x128xf32, #tpu.memory_space<vmem>>, vector<16x128xf32>,
    %c0_6 = arith.constant 0 : index
    %c0_7 = arith.constant 0 : index
    %17 = vector.load %arg2[%c0_6, %c0_7] : memref<16x128xf32, #tpu.memory_space<vmem>>, vector<16x128xf32>
    %18 = vector.shape_cast %17 : vector<16x128xf32> to vector<1x16x128xf32>
    %cst_8 = arith.constant dense<0x7F800000> : vector<1xf32>
    %19 = vector.multi_reduction <minimumf>, %18, %cst_8 [1, 2] : vector<1x16x128xf32> to vector<1xf32>
    %20 = vector.shape_cast %19 : vector<1xf32> to vector<1x1x1xf32>
    %21 = vector.extract %20[0, 0, 0] : f32 from vector<1x1x1xf32>
    %22 = vector.shape_cast %17 : vector<16x128xf32> to vector<1x16x128xf32>
    %cst_9 = arith.constant dense<0xFF800000> : vector<1xf32>
    %23 = vector.multi_reduction <maximumf>, %22, %cst_9 [1, 2] : vector<1x16x128xf32> to vector<1xf32>
    %24 = vector.shape_cast %23 : vector<1xf32> to vector<1x1x1xf32>
    %25 = vector.extract %24[0, 0, 0] : f32 from vector<1x1x1xf32>
    %26 = arith.subf %25, %21 : f32
    %cst_10 = arith.constant 9.99999997E-7 : f32
    %27 = arith.addf %26, %cst_10 : f32
    %cst_11 = arith.constant 1.000000e+00 : f32
    %28 = arith.divf %cst_11, %27 : f32
    %29 = vector.broadcast %21 : f32 to vector<16x128xf32>
    %30 = arith.subf %17, %29 : vector<16x128xf32>
    %31 = vector.broadcast %28 : f32 to vector<16x128xf32>
    %32 = arith.mulf %30, %31 : vector<16x128xf32>
    %c0_12 = arith.constant 0 : index
    %c0_13 = arith.constant 0 : index
    %33 = vector.load %arg7[%c0_12, %c0_13] : memref<16x128xf32, #tpu.memory_space<vmem>>, vector<16x128xf32>
    tpu.vector_store %arg7[%c0_12, %c0_13], %32 {strides = array<i32>} : memref<16x128xf32, #tpu.memory_space<vmem>>, vector<16x128xf32>,
    %c0_14 = arith.constant 0 : index
    %c0_15 = arith.constant 0 : index
    %34 = vector.load %arg3[%c0_14, %c0_15] : memref<16x128xf32, #tpu.memory_space<vmem>>, vector<16x128xf32>
    %35 = vector.shape_cast %34 : vector<16x128xf32> to vector<1x16x128xf32>
    %cst_16 = arith.constant dense<0x7F800000> : vector<1xf32>
    %36 = vector.multi_reduction <minimumf>, %35, %cst_16 [1, 2] : vector<1x16x128xf32> to vector<1xf32>
    %37 = vector.shape_cast %36 : vector<1xf32> to vector<1x1x1xf32>
    %38 = vector.extract %37[0, 0, 0] : f32 from vector<1x1x1xf32>
    %39 = vector.shape_cast %34 : vector<16x128xf32> to vector<1x16x128xf32>
    %cst_17 = arith.constant dense<0xFF800000> : vector<1xf32>
    %40 = vector.multi_reduction <maximumf>, %39, %cst_17 [1, 2] : vector<1x16x128xf32> to vector<1xf32>
    %41 = vector.shape_cast %40 : vector<1xf32> to vector<1x1x1xf32>
    %42 = vector.extract %41[0, 0, 0] : f32 from vector<1x1x1xf32>
    %43 = arith.subf %42, %38 : f32
    %cst_18 = arith.constant 9.99999997E-7 : f32
    %44 = arith.addf %43, %cst_18 : f32
    %cst_19 = arith.constant 1.000000e+00 : f32
    %45 = arith.divf %cst_19, %44 : f32
    %46 = vector.broadcast %38 : f32 to vector<16x128xf32>
    %47 = arith.subf %34, %46 : vector<16x128xf32>
    %48 = vector.broadcast %45 : f32 to vector<16x128xf32>
    %49 = arith.mulf %47, %48 : vector<16x128xf32>
    %c0_20 = arith.constant 0 : index
    %c0_21 = arith.constant 0 : index
    %50 = vector.load %arg8[%c0_20, %c0_21] : memref<16x128xf32, #tpu.memory_space<vmem>>, vector<16x128xf32>
    tpu.vector_store %arg8[%c0_20, %c0_21], %49 {strides = array<i32>} : memref<16x128xf32, #tpu.memory_space<vmem>>, vector<16x128xf32>,
    %c0_22 = arith.constant 0 : index
    %c0_23 = arith.constant 0 : index
    %51 = vector.load %arg4[%c0_22, %c0_23] : memref<4x128xi32, #tpu.memory_space<vmem>>, vector<4x128xi32>
    %52 = arith.sitofp %51 : vector<4x128xi32> to vector<4x128xf32>
    %53 = vector.shape_cast %52 : vector<4x128xf32> to vector<1x4x128xf32>
    %cst_24 = arith.constant dense<0x7F800000> : vector<1xf32>
    %54 = vector.multi_reduction <minimumf>, %53, %cst_24 [1, 2] : vector<1x4x128xf32> to vector<1xf32>
    %55 = vector.shape_cast %54 : vector<1xf32> to vector<1x1x1xf32>
    %56 = vector.extract %55[0, 0, 0] : f32 from vector<1x1x1xf32>
    %57 = vector.shape_cast %52 : vector<4x128xf32> to vector<1x4x128xf32>
    %cst_25 = arith.constant dense<0xFF800000> : vector<1xf32>
    %58 = vector.multi_reduction <maximumf>, %57, %cst_25 [1, 2] : vector<1x4x128xf32> to vector<1xf32>
    %59 = vector.shape_cast %58 : vector<1xf32> to vector<1x1x1xf32>
    %60 = vector.extract %59[0, 0, 0] : f32 from vector<1x1x1xf32>
    %61 = arith.subf %60, %56 : f32
    %cst_26 = arith.constant 9.99999997E-7 : f32
    %62 = arith.addf %61, %cst_26 : f32
    %cst_27 = arith.constant 1.000000e+00 : f32
    %63 = arith.divf %cst_27, %62 : f32
    %64 = vector.broadcast %56 : f32 to vector<4x128xf32>
    %65 = arith.subf %52, %64 : vector<4x128xf32>
    %66 = vector.broadcast %63 : f32 to vector<4x128xf32>
    %67 = arith.mulf %65, %66 : vector<4x128xf32>
    %c0_28 = arith.constant 0 : index
    %c0_29 = arith.constant 0 : index
    %68 = vector.load %arg9[%c0_28, %c0_29] : memref<4x128xf32, #tpu.memory_space<vmem>>, vector<4x128xf32>
    tpu.vector_store %arg9[%c0_28, %c0_29], %67 {strides = array<i32>} : memref<4x128xf32, #tpu.memory_space<vmem>>, vector<4x128xf32>,
    %c0_30 = arith.constant 0 : index
    %c0_31 = arith.constant 0 : index
    %69 = vector.load %arg5[%c0_30, %c0_31] : memref<4x128xi32, #tpu.memory_space<vmem>>, vector<4x128xi32>
    %70 = arith.sitofp %69 : vector<4x128xi32> to vector<4x128xf32>
    %71 = vector.shape_cast %70 : vector<4x128xf32> to vector<1x4x128xf32>
    %cst_32 = arith.constant dense<0x7F800000> : vector<1xf32>
    %72 = vector.multi_reduction <minimumf>, %71, %cst_32 [1, 2] : vector<1x4x128xf32> to vector<1xf32>
    %73 = vector.shape_cast %72 : vector<1xf32> to vector<1x1x1xf32>
    %74 = vector.extract %73[0, 0, 0] : f32 from vector<1x1x1xf32>
    %75 = vector.shape_cast %70 : vector<4x128xf32> to vector<1x4x128xf32>
    %cst_33 = arith.constant dense<0xFF800000> : vector<1xf32>
    %76 = vector.multi_reduction <maximumf>, %75, %cst_33 [1, 2] : vector<1x4x128xf32> to vector<1xf32>
    %77 = vector.shape_cast %76 : vector<1xf32> to vector<1x1x1xf32>
    %78 = vector.extract %77[0, 0, 0] : f32 from vector<1x1x1xf32>
    %79 = arith.subf %78, %74 : f32
    %cst_34 = arith.constant 9.99999997E-7 : f32
    %80 = arith.addf %79, %cst_34 : f32
    %cst_35 = arith.constant 1.000000e+00 : f32
    %81 = arith.divf %cst_35, %80 : f32
    %82 = vector.broadcast %74 : f32 to vector<4x128xf32>
    %83 = arith.subf %70, %82 : vector<4x128xf32>
    %84 = vector.broadcast %81 : f32 to vector<4x128xf32>
    %85 = arith.mulf %83, %84 : vector<4x128xf32>
    %c0_36 = arith.constant 0 : index
    %c0_37 = arith.constant 0 : index
    %86 = vector.load %arg10[%c0_36, %c0_37] : memref<4x128xf32, #tpu.memory_space<vmem>>, vector<4x128xf32>
    tpu.vector_store %arg10[%c0_36, %c0_37], %85 {strides = array<i32>} : memref<4x128xf32, #tpu.memory_space<vmem>>, vector<4x128xf32>,
    return
  }
  func.func @transform_0(%arg0: i32) -> (i32, i32) {
    %c0_i32 = arith.constant 0 : i32
    %c0_i32_0 = arith.constant 0 : i32
    %c0_i32_1 = arith.constant 0 : i32
    return %c0_i32, %c0_i32_0 : i32, i32
  }
  func.func @transform_1(%arg0: i32) -> (i32, i32) {
    %c0_i32 = arith.constant 0 : i32
    %c0_i32_0 = arith.constant 0 : i32
    %c0_i32_1 = arith.constant 0 : i32
    return %c0_i32, %c0_i32_0 : i32, i32
  }
  func.func @transform_2(%arg0: i32) -> (i32, i32) {
    %c0_i32 = arith.constant 0 : i32
    %c0_i32_0 = arith.constant 0 : i32
    %c0_i32_1 = arith.constant 0 : i32
    return %c0_i32, %c0_i32_0 : i32, i32
  }
  func.func @transform_3(%arg0: i32) -> (i32, i32) {
    %c0_i32 = arith.constant 0 : i32
    %c0_i32_0 = arith.constant 0 : i32
    %c0_i32_1 = arith.constant 0 : i32
    return %c0_i32, %c0_i32_0 : i32, i32
  }
  func.func @transform_4(%arg0: i32) -> (i32, i32) {
    %c0_i32 = arith.constant 0 : i32
    %c0_i32_0 = arith.constant 0 : i32
    %c0_i32_1 = arith.constant 0 : i32
    return %c0_i32, %c0_i32_0 : i32, i32
  }
  func.func @transform_5(%arg0: i32) -> (i32, i32) {
    %c0_i32 = arith.constant 0 : i32
    %c0_i32_0 = arith.constant 0 : i32
    %c0_i32_1 = arith.constant 0 : i32
    return %c0_i32, %c0_i32_0 : i32, i32
  }
  func.func @transform_6(%arg0: i32) -> (i32, i32) {
    %c0_i32 = arith.constant 0 : i32
    %c0_i32_0 = arith.constant 0 : i32
    %c0_i32_1 = arith.constant 0 : i32
    return %c0_i32, %c0_i32_0 : i32, i32
  }
  func.func @transform_7(%arg0: i32) -> (i32, i32) {
    %c0_i32 = arith.constant 0 : i32
    %c0_i32_0 = arith.constant 0 : i32
    %c0_i32_1 = arith.constant 0 : i32
    return %c0_i32, %c0_i32_0 : i32, i32
  }
  func.func @transform_8(%arg0: i32) -> (i32, i32) {
    %c0_i32 = arith.constant 0 : i32
    %c0_i32_0 = arith.constant 0 : i32
    %c0_i32_1 = arith.constant 0 : i32
    return %c0_i32, %c0_i32_0 : i32, i32
  }
  func.func @transform_9(%arg0: i32) -> (i32, i32) {
    %c0_i32 = arith.constant 0 : i32
    %c0_i32_0 = arith.constant 0 : i32
    %c0_i32_1 = arith.constant 0 : i32
    return %c0_i32, %c0_i32_0 : i32, i32
  }
}

</mosaic_0001>

<bundles_post_ra>
// kernel: tpu_custom_call.1
= control target key start
LH: loop header
LB: loop body
LE: loop exit
PB: predicated region body
PF: predicated region fallthrough
CT: control target
= control target key end

     0   :  { %15 = vsyncpa [#allocation3], 0  ;;  %s789_s0 = inlined_call_operand.hbm [shape: f32[16,128], index: 0, kind: input, shape index: {}]   ;;  %s790_s1 = inlined_call_operand.hbm [shape: f32[16,128], index: 1, kind: input, shape index: {}]   ;;  %s791_s2 = inlined_call_operand.hbm [shape: f32[16,128], index: 2, kind: input, shape index: {}]   ;;  %s792_s3 = inlined_call_operand.vmem [shape: s32[4,128], index: 3, kind: input, shape index: {}]   ;;  %s793_s4 = inlined_call_operand.vmem [shape: s32[4,128], index: 4, kind: input, shape index: {}]   ;;  %s794_s5 = inlined_call_operand.hbm [shape: f32[16,128], index: 5, kind: output, shape index: {0}]   ;;  %s795_s6 = inlined_call_operand.hbm [shape: f32[16,128], index: 6, kind: output, shape index: {1}]   ;;  %s796_s7 = inlined_call_operand.hbm [shape: f32[16,128], index: 7, kind: output, shape index: {2}]   ;;  %s797_s8 = inlined_call_operand.hbm [shape: f32[4,128], index: 8, kind: output, shape index: {3}]   ;;  %s798_s9 = inlined_call_operand.hbm [shape: f32[4,128], index: 9, kind: output, shape index: {4}]  }
   0x1   :  { %16 = vsyncpa [#allocation6], 0 }
   0x2   :  { %17 = vsyncpa [#allocation4], 0 }
   0x3   :  { %18 = vsyncpa [#allocation10], 0 }
   0x4   :  { %19 = vsyncpa [#allocation13], 0  ;;  %s551_s30 = smov [#allocation5]   ;;  %s552_s11 = smov [#allocation2]  }
   0x5   :  { %s37_s10 = sshll.u32 %s551_s30, 4  ;;  %s25_s12 = sshll.u32 %s552_s11, 4  ;;  %s38_s10 = int_to_ptr.vmem [resolvable:$true] %s37_s10  ;;  %s611_s12 = int_to_ptr.vmem [resolvable:$true] %s25_s12 }
   0x6   :  { %s365_s15 = scalar_lea.hbm %s790_s1, 256 }
   0x7   :  { %p366_p0 = scmp.ne.s32.totalorder %s790_s1, %s365_s15  ;;  %p369_p1 = scmp.lt.u32.totalorder %s365_s15, %s790_s1 }
   0x9   :  { %p371_p2 = pnand %p369_p1, %p366_p0 }
   0xb   :  { %374 = shalt.err (!%p371_p2)
}
   0xc   :  { %s375_s20 = scalar_lea.vmem %s38_s10, 256  ;;  %p380_p4 = scmp.lt.s32.totalorder %s38_s10, %s38_s10 }
   0xd   :  { %p376_p3 = scmp.ne.s32.totalorder %s38_s10, %s375_s20  ;;  %p381_p5 = scmp.lt.s32.totalorder %s375_s20, %s375_s20 }
   0xf   :  { %p382_p6 = por %p381_p5, %p380_p4 }
  0x11   :  { %p383_p7 = pnand %p382_p6, %p376_p3 }
  0x13   :  { %386 = shalt.err (!%p383_p7)
}
  0x14   :  { %s553_s21 = smov 128   ;;  %s554_s22 = smov 8  }
  0x15   :  { %43 = dma.hbm_to_vmem [thread:$0]  %s790_s1, 256, %s38_s10, [#allocation6], %s553_s21, %s553_s21, %s554_s22  }
  0x16   :  { %s387_s27 = scalar_lea.hbm %s789_s0, 256 }
  0x17   :  { %p388_p8 = scmp.ne.s32.totalorder %s789_s0, %s387_s27  ;;  %p391_p9 = scmp.lt.u32.totalorder %s387_s27, %s789_s0 }
  0x19   :  { %p393_p10 = pnand %p391_p9, %p388_p8 }
  0x1b   :  { %396 = shalt.err (!%p393_p10)
}
  0x1c   :  { %s397_s13 = scalar_lea.vmem %s611_s12, 256  ;;  %p402_p12 = scmp.lt.s32.totalorder %s611_s12, %s611_s12 }
  0x1d   :  { %p398_p11 = scmp.ne.s32.totalorder %s611_s12, %s397_s13  ;;  %p403_p13 = scmp.lt.s32.totalorder %s397_s13, %s397_s13 }
  0x1f   :  { %p404_p0 = por %p403_p13, %p402_p12 }
  0x21   :  { %p405_p1 = pnand %p404_p0, %p398_p11 }
  0x23   :  { %408 = shalt.err (!%p405_p1)
}
  0x24   :  { %31 = dma.hbm_to_vmem [thread:$0]  %s789_s0, 256, %s611_s12, [#allocation3], %s553_s21, %s553_s21, %s554_s22  }
  0x25   :  { %s555_s14 = smov [#allocation7]   ;;  %s409_s18 = scalar_lea.hbm %s791_s2, 256 }
  0x26   :  { %s49_s15 = sshll.u32 %s555_s14, 4  ;;  %p410_p2 = scmp.ne.s32.totalorder %s791_s2, %s409_s18  ;;  %s50_s15 = int_to_ptr.vmem [resolvable:$true] %s49_s15 }
  0x27   :  { %p413_p3 = scmp.lt.u32.totalorder %s409_s18, %s791_s2 }
  0x29   :  { %p415_p4 = pnand %p413_p3, %p410_p2 }
  0x2b   :  { %418 = shalt.err (!%p415_p4)
}
  0x2c   :  { %s419_s25 = scalar_lea.vmem %s50_s15, 256  ;;  %p424_p6 = scmp.lt.s32.totalorder %s50_s15, %s50_s15 }
  0x2d   :  { %p420_p5 = scmp.ne.s32.totalorder %s50_s15, %s419_s25  ;;  %p425_p7 = scmp.lt.s32.totalorder %s419_s25, %s419_s25 }
  0x2f   :  { %p426_p8 = por %p425_p7, %p424_p6 }
  0x31   :  { %p427_p9 = pnand %p426_p8, %p420_p5 }
  0x33   :  { %430 = shalt.err (!%p427_p9)
}
  0x34   :  { %55 = dma.hbm_to_vmem [thread:$0]  %s791_s2, 256, %s50_s15, [#allocation6], %s553_s21, %s553_s21, %s554_s22  }
  0x35   :  { %541 = dma.done.wait [#allocation3], 256  }
  0x36   :  { %542 = vsyncadd [#allocation3], 4294967040 }
  0x37   :  { %543 = dma.done.wait [#allocation6], 512  }
  0x38   :  { %544 = vsyncadd [#allocation6], 4294966784  ;;  %v663_v0 = vld [vmem:[#allocation2] sm:$0xff]  ;;  %v665_v1 = vld [vmem:[#allocation2 + $0x8] sm:$0xff]  ;;  %vm176_vm0 = vcmask 1043456   ;;  %s556_s12 = smov [#allocation9]  }
  0x39   :  { %v667_v2 = vld [vmem:[#allocation5] sm:$0xff]  ;;  %v71_v3 = vmin.f32 %v663_v0, %v665_v1  ;;  %v671_v4 = vld [vmem:[#allocation5 + $0x8] sm:$0xff]  ;;  %v81_v6 = vmax.f32 %v663_v0, %v665_v1  ;;  %v679_v8 = vld [vmem:[#allocation7] sm:$0xff]  ;;  %s256_s2 = sshll.u32 %s556_s12, 4  ;;  %s257_s2 = int_to_ptr.vmem [resolvable:$true] %s256_s2 }
  0x3a   :  { %v106_v5 = vmin.f32 %v667_v2, %v671_v4  ;;  %v116_v7 = vmax.f32 %v667_v2, %v671_v4  ;;  %v681_v9 = vld [vmem:[#allocation7 + $0x8] sm:$0xff]  ;;  %v174_v12 = vld [vmem:[%s792_s3] sm:$0xf]  ;;  %s431_s26 = scalar_lea.vmem %s257_s2, 256  ;;  %p436_p11 = scmp.lt.s32.totalorder %s257_s2, %s257_s2 }
  0x3b   :  { %72 = vmin.xlane.f32.xlu0 %v71_v3  ;;  %v141_v10 = vmin.f32 %v679_v8, %v681_v9  ;;  %v151_v11 = vmax.f32 %v679_v8, %v681_v9  ;;  %v690_v13 = vcvt.s32.f32 %v174_v12  ;;  %v207_v16 = vld [vmem:[%s793_s4] sm:$0xf]  ;;  %p432_p10 = scmp.ne.s32.totalorder %s257_s2, %s431_s26  ;;  %p437_p12 = scmp.lt.s32.totalorder %s431_s26, %s431_s26 }
  0x3c   :  { %107 = vmin.xlane.f32.xlu1 %v106_v5  ;;  %v697_v17 = vcvt.s32.f32 %v207_v16 }
  0x3d   :  { %v187_v14 = vsel %vm176_vm0, %v690_v13, -inf  ;;  %v177_v15 = vsel %vm176_vm0, %v690_v13, inf  ;;  %p438_p13 = por %p437_p12, %p436_p11 }
  0x3e   :  { %v219_v18 = vsel %vm176_vm0, %v697_v17, -inf  ;;  %v209_v19 = vsel %vm176_vm0, %v697_v17, inf }
  0x3f   :  { %82 = vmax.xlane.f32.xlu0 %v81_v6  ;;  %p439_p0 = pnand %p438_p13, %p432_p10 }
  0x40   :  { %117 = vmax.xlane.f32.xlu1 %v116_v7 }
  0x43   :  { %142 = vmin.xlane.f32.xlu0 %v141_v10 }
  0x44   :  { %152 = vmax.xlane.f32.xlu1 %v151_v11 }
  0x47   :  { %178 = vmin.xlane.f32.xlu0 %v177_v15 }
  0x48   :  { %188 = vmax.xlane.f32.xlu1 %v187_v14 }
  0x4b   :  { %210 = vmin.xlane.f32.xlu0 %v209_v19 }
  0x4c   :  { %220 = vmax.xlane.f32.xlu1 %v219_v18 }
  0xc8   :  { %v73_v20 = vpop.xlane.xlu0 %72 }
  0xc9   :  { %v74_v21 = vrot.slane %v73_v20, 4  ;;  %v108_v34 = vpop.xlane.xlu1 %107 }
  0xca   :  { %v109_v36 = vrot.slane %v108_v34, 4 }
  0xcb   :  { %v75_v22 = vmin.f32 %v73_v20, %v74_v21 }
  0xcc   :  { %v83_v23 = vpop.xlane.xlu0 %82  ;;  %v110_v38 = vmin.f32 %v108_v34, %v109_v36 }
  0xcd   :  { %v76_v24 = vrot.slane %v75_v22, 2  ;;  %v84_v25 = vrot.slane %v83_v23, 4  ;;  %v118_v35 = vpop.xlane.xlu1 %117 }
  0xce   :  { %v119_v37 = vrot.slane %v118_v35, 4  ;;  %v111_v40 = vrot.slane %v110_v38, 2 }
  0xcf   :  { %v85_v26 = vmax.f32 %v83_v23, %v84_v25  ;;  %v77_v27 = vmin.f32 %v75_v22, %v76_v24 }
  0xd0   :  { %v120_v39 = vmax.f32 %v118_v35, %v119_v37  ;;  %v112_v43 = vmin.f32 %v110_v38, %v111_v40  ;;  %v143_v50 = vpop.xlane.xlu0 %142 }
  0xd1   :  { %v86_v28 = vrot.slane %v85_v26, 2  ;;  %v78_v29 = vrot.slane %v77_v27, 1  ;;  %v153_v51 = vpop.xlane.xlu1 %152  ;;  %v144_v53 = vrot.slane %v143_v50, 4 }
  0xd2   :  { %v121_v41 = vrot.slane %v120_v39, 2  ;;  %v113_v45 = vrot.slane %v112_v43, 1  ;;  %v154_v54 = vrot.slane %v153_v51, 4 }
  0xd3   :  { %v79_v30 = vmin.f32 %v77_v27, %v78_v29  ;;  %v87_v31 = vmax.f32 %v85_v26, %v86_v28  ;;  %v145_v58 = vmin.f32 %v143_v50, %v144_v53 }
  0xd4   :  { %v122_v44 = vmax.f32 %v120_v39, %v121_v41  ;;  %v114_v48 = vmin.f32 %v112_v43, %v113_v45  ;;  %v155_v61 = vmax.f32 %v153_v51, %v154_v54  ;;  %v179_v12 = vpop.xlane.xlu0 %178 }
  0xd5   :  { %315 = vpush %v79_v30  ;;  %v88_v32 = vrot.slane %v87_v31, 1  ;;  %v146_v62 = vrot.slane %v145_v58, 2  ;;  %v189_v14 = vpop.xlane.xlu1 %188  ;;  %v180_v16 = vrot.slane %v179_v12, 4 }
  0xd6   :  { %v123_v46 = vrot.slane %v122_v44, 1  ;;  %v156_v63 = vrot.slane %v155_v61, 2  ;;  %v190_v18 = vrot.slane %v189_v14, 4 }
  0xd7   :  { %v89_v33 = vmax.f32 %v87_v31, %v88_v32  ;;  %v147_v5 = vmin.f32 %v145_v58, %v146_v62  ;;  %v181_v22 = vmin.f32 %v179_v12, %v180_v16 }
  0xd8   :  { %v124_v49 = vmax.f32 %v122_v44, %v123_v46  ;;  %v191_v25 = vmax.f32 %v189_v14, %v190_v18  ;;  %v211_v34 = vpop.xlane.xlu0 %210 }
  0xd9   :  { %317 = vpush %v89_v33  ;;  %v148_v6 = vrot.slane %v147_v5, 1  ;;  %v182_v26 = vrot.slane %v181_v22, 2  ;;  %v221_v35 = vpop.xlane.xlu1 %220  ;;  %v212_v37 = vrot.slane %v211_v34, 4 }
  0xda   :  { %v192_v27 = vrot.slane %v191_v25, 2  ;;  %v222_v38 = vrot.slane %v221_v35, 4 }
  0xdb   :  { %v149_v10 = vmin.f32 %v147_v5, %v148_v6  ;;  %v183_v29 = vmin.f32 %v181_v22, %v182_v26 }
  0xdc   :  { %v223_v45 = vmax.f32 %v221_v35, %v222_v38 }
  0xdd   :  { %v184_v30 = vrot.slane %v183_v29, 1 }
  0xdf   :  { %v185_v32 = vmin.f32 %v183_v29, %v184_v30 }
 0x106   :  { %s316_s3 = spop %315 }
 0x107   :  { %v96_v52 = vstv %s316_s3 }
 0x108   :  { %v97_v55 = vsub.f32 %v663_v0, %v96_v52  ;;  %v98_v56 = vsub.f32 %v665_v1, %v96_v52  ;;  %v157_v0 = vmax.f32 %v155_v61, %v156_v63 }
 0x10a   :  { %s318_s4 = spop %317  ;;  %v158_v1 = vrot.slane %v157_v0, 1 }
 0x10b   :  { %s91_s29 = ssub.f32 %s318_s4, %s316_s3 }
 0x10c   :  { %v159_v11 = vmax.f32 %v157_v0, %v158_v1 }
 0x10d   :  { %s92_s30 = sadd.f32 1e-06, %s91_s29 }
 0x10f   :  { %v93_v42 = vstv %s92_s30 }
 0x110   :  { %355 = vrcp.f32 %v93_v42  ;;  %v213_v42 = vmin.f32 %v211_v34, %v212_v37 }
 0x112   :  { %v214_v46 = vrot.slane %v213_v42, 2 }
 0x11a   :  { %v356_v47 = vpop.eup %355 }
 0x11b   :  { %319 = vpush %v356_v47  ;;  %v224_v47 = vrot.slane %v223_v45, 2 }
 0x11c   :  { %321 = vpush %v114_v48 }
 0x11d   :  { %323 = vpush %v124_v49 }
 0x14c   :  { %s320_s11 = spop %319 }
 0x14d   :  { %v99_v57 = vstv %s320_s11  ;;  %s322_s13 = spop %321 }
 0x14e   :  { %v100_v59 = vmul.f32 %v99_v57, %v97_v55  ;;  %v101_v60 = vmul.f32 %v99_v57, %v98_v56  ;;  %s324_s1 = spop %323  ;;  %v131_v15 = vstv %s322_s13 }
 0x14f   :  { %s126_s10 = ssub.f32 %s324_s1, %s322_s13  ;;  %v132_v19 = vsub.f32 %v667_v2, %v131_v15  ;;  %v133_v20 = vsub.f32 %v671_v4, %v131_v15  ;;  %v193_v2 = vmax.f32 %v191_v25, %v192_v27 }
 0x150   :  { %102 = vst [vmem:[#allocation8] sm:$0xff] %v100_v59  ;;  %103 = vst [vmem:[#allocation8 + $0x8] sm:$0xff] %v101_v60 }
 0x151   :  { %s127_s14 = sadd.f32 1e-06, %s126_s10  ;;  %v194_v4 = vrot.slane %v193_v2, 1 }
 0x153   :  { %v128_v3 = vstv %s127_s14  ;;  %v195_v33 = vmax.f32 %v193_v2, %v194_v4 }
 0x154   :  { %357 = vrcp.f32 %v128_v3 }
 0x15e   :  { %v358_v7 = vpop.eup %357 }
 0x15f   :  { %325 = vpush %v358_v7 }
 0x160   :  { %327 = vpush %v149_v10 }
 0x161   :  { %329 = vpush %v159_v11 }
 0x190   :  { %s326_s15 = spop %325 }
 0x191   :  { %v134_v21 = vstv %s326_s15  ;;  %s328_s16 = spop %327 }
 0x192   :  { %v135_v23 = vmul.f32 %v134_v21, %v132_v19  ;;  %v136_v24 = vmul.f32 %v134_v21, %v133_v20  ;;  %s330_s17 = spop %329  ;;  %v166_v36 = vstv %s328_s16 }
 0x193   :  { %s161_s18 = ssub.f32 %s330_s17, %s328_s16  ;;  %v167_v39 = vsub.f32 %v679_v8, %v166_v36  ;;  %v168_v40 = vsub.f32 %v681_v9, %v166_v36  ;;  %v215_v8 = vmin.f32 %v213_v42, %v214_v46  ;;  %v225_v9 = vmax.f32 %v223_v45, %v224_v47 }
 0x194   :  { %137 = vst [vmem:[#allocation9] sm:$0xff] %v135_v23  ;;  %138 = vst [vmem:[#allocation9 + $0x8] sm:$0xff] %v136_v24 }
 0x195   :  { %s162_s19 = sadd.f32 1e-06, %s161_s18 }
 0x197   :  { %v163_v28 = vstv %s162_s19 }
 0x198   :  { %359 = vrcp.f32 %v163_v28 }
 0x1a2   :  { %v360_v31 = vpop.eup %359 }
 0x1a3   :  { %331 = vpush %v360_v31 }
 0x1a4   :  { %333 = vpush %v185_v32 }
 0x1a5   :  { %335 = vpush %v195_v33 }
 0x1d4   :  { %s332_s20 = spop %331 }
 0x1d5   :  { %v169_v41 = vstv %s332_s20  ;;  %s707_s23 = spop %333 }
 0x1d6   :  { %v170_v43 = vmul.f32 %v169_v41, %v167_v39  ;;  %v171_v44 = vmul.f32 %v169_v41, %v168_v40  ;;  %s336_s24 = spop %335 }
 0x1d7   :  { %s197_s25 = ssub.f32 %s336_s24, %s707_s23 }
 0x1d8   :  { %172 = vst [vmem:[#allocation11] sm:$0xff] %v170_v43  ;;  %173 = vst [vmem:[#allocation11 + $0x8] sm:$0xff] %v171_v44 }
 0x1d9   :  { %s198_s0 = sadd.f32 1e-06, %s197_s25 }
 0x1db   :  { %v199_v48 = vstv %s198_s0 }
 0x1dc   :  { %361 = vrcp.f32 %v199_v48 }
 0x1dd   :  { %442 = shalt.err (!%p439_p0)
}
 0x1de   :  { %s443_s3 = scalar_lea.hbm %s795_s6, 256 }
 0x1df   :  { %p444_p1 = scmp.ne.s32.totalorder %s795_s6, %s443_s3  ;;  %p447_p2 = scmp.lt.u32.totalorder %s443_s3, %s795_s6 }
 0x1e1   :  { %p449_p3 = pnand %p447_p2, %p444_p1 }
 0x1e3   :  { %452 = shalt.err (!%p449_p3)
}
 0x1e4   :  { %262 = dma.vmem_to_hbm [thread:$0]  %s257_s2, 256, %s795_s6, [#allocation10], %s553_s21, %s553_s21, %s554_s22   ;;  %v216_v49 = vrot.slane %v215_v8, 1  ;;  %v226_v50 = vrot.slane %v225_v9, 1 }
 0x1e5   :  { %s557_s10 = smov [#allocation8]   ;;  %s558_s15 = smov [#allocation11]  }
 0x1e6   :  { %s244_s14 = sshll.u32 %s557_s10, 4  ;;  %s268_s16 = sshll.u32 %s558_s15, 4  ;;  %s245_s14 = int_to_ptr.vmem [resolvable:$true] %s244_s14  ;;  %s725_s16 = int_to_ptr.vmem [resolvable:$true] %s268_s16 }
 0x1e7   :  { %s453_s17 = scalar_lea.vmem %s245_s14, 256  ;;  %p458_p5 = scmp.lt.s32.totalorder %s245_s14, %s245_s14 }
 0x1e8   :  { %p454_p4 = scmp.ne.s32.totalorder %s245_s14, %s453_s17  ;;  %p459_p6 = scmp.lt.s32.totalorder %s453_s17, %s453_s17 }
 0x1ea   :  { %p460_p7 = por %p459_p6, %p458_p5 }
 0x1ec   :  { %p461_p8 = pnand %p460_p7, %p454_p4 }
 0x1ee   :  { %464 = shalt.err (!%p461_p8)
}
 0x1ef   :  { %s465_s6 = scalar_lea.hbm %s794_s5, 256 }
 0x1f0   :  { %p466_p9 = scmp.ne.s32.totalorder %s794_s5, %s465_s6  ;;  %p469_p10 = scmp.lt.u32.totalorder %s465_s6, %s794_s5 }
 0x1f2   :  { %p471_p11 = pnand %p469_p10, %p466_p9 }
 0x1f4   :  { %474 = shalt.err (!%p471_p11)
}
 0x1f5   :  { %250 = dma.vmem_to_hbm [thread:$0]  %s245_s14, 256, %s794_s5, [#allocation4], %s553_s21, %s553_s21, %s554_s22  }
 0x1f6   :  { %s475_s26 = scalar_lea.vmem %s725_s16, 256  ;;  %p480_p13 = scmp.lt.s32.totalorder %s725_s16, %s725_s16 }
 0x1f7   :  { %p476_p12 = scmp.ne.s32.totalorder %s725_s16, %s475_s26  ;;  %p481_p0 = scmp.lt.s32.totalorder %s475_s26, %s475_s26 }
 0x1f9   :  { %p482_p1 = por %p481_p0, %p480_p13 }
 0x1fb   :  { %p483_p2 = pnand %p482_p1, %p476_p12 }
 0x1fd   :  { %486 = shalt.err (!%p483_p2)
}
 0x1fe   :  { %s487_s3 = scalar_lea.hbm %s796_s7, 256 }
 0x1ff   :  { %p488_p3 = scmp.ne.s32.totalorder %s796_s7, %s487_s3  ;;  %p491_p4 = scmp.lt.u32.totalorder %s487_s3, %s796_s7 }
 0x201   :  { %p493_p5 = pnand %p491_p4, %p488_p3 }
 0x203   :  { %496 = shalt.err (!%p493_p5)
}
 0x204   :  { %274 = dma.vmem_to_hbm [thread:$0]  %s725_s16, 256, %s796_s7, [#allocation10], %s553_s21, %s553_s21, %s554_s22   ;;  %v362_v51 = vpop.eup %361  ;;  %v217_v52 = vmin.f32 %v215_v8, %v216_v49  ;;  %v227_v53 = vmax.f32 %v225_v9, %v226_v50 }
 0x205   :  { %337 = vpush %v362_v51  ;;  %v202_v54 = vstv %s707_s23  ;;  %s559_s10 = smov [#allocation12]  }
 0x206   :  { %339 = vpush %v217_v52  ;;  %v203_v55 = vsub.f32 %v690_v13, %v202_v54  ;;  %s281_s14 = sshll.u32 %s559_s10, 4  ;;  %s282_s14 = int_to_ptr.vmem [resolvable:$true] %s281_s14 }
 0x207   :  { %341 = vpush %v227_v53  ;;  %s497_s21 = scalar_lea.vmem %s282_s14, 64  ;;  %p502_p7 = scmp.lt.s32.totalorder %s282_s14, %s282_s14 }
 0x208   :  { %p498_p6 = scmp.ne.s32.totalorder %s282_s14, %s497_s21  ;;  %p503_p8 = scmp.lt.s32.totalorder %s497_s21, %s497_s21 }
 0x20a   :  { %p504_p9 = por %p503_p8, %p502_p7 }
 0x20c   :  { %p505_p10 = pnand %p504_p9, %p498_p6 }
 0x236   :  { %s338_s1 = spop %337 }
 0x237   :  { %v204_v56 = vstv %s338_s1  ;;  %s340_s15 = spop %339 }
 0x238   :  { %v205_v57 = vmul.f32 %v204_v56, %v203_v55  ;;  %s342_s17 = spop %341 }
 0x239   :  { %s229_s18 = ssub.f32 %s342_s17, %s340_s15 }
 0x23a   :  { %206 = vst [vmem:[#allocation12] sm:$0xf] %v205_v57 }
 0x23b   :  { %s230_s7 = sadd.f32 1e-06, %s229_s18 }
 0x23c   :  { %508 = shalt.err (!%p505_p10)
}
 0x23d   :  { %s509_s16 = scalar_lea.hbm %s797_s8, 64 }
 0x23e   :  { %p510_p11 = scmp.ne.s32.totalorder %s797_s8, %s509_s16  ;;  %p513_p12 = scmp.lt.u32.totalorder %s509_s16, %s797_s8 }
 0x240   :  { %p515_p13 = pnand %p513_p12, %p510_p11 }
 0x242   :  { %518 = shalt.err (!%p515_p13)
}
 0x243   :  { %284 = dma.vmem_to_hbm [thread:$0]  %s282_s14, 64, %s797_s8, [#allocation13]   ;;  %v231_v13 = vstv %s230_s7  ;;  %v234_v59 = vstv %s340_s15 }
 0x244   :  { %363 = vrcp.f32 %v231_v13  ;;  %s560_s12 = smov [#allocation14]   ;;  %v235_v60 = vsub.f32 %v697_v17, %v234_v59 }
 0x245   :  { %s291_s2 = sshll.u32 %s560_s12, 4  ;;  %s292_s2 = int_to_ptr.vmem [resolvable:$true] %s291_s2 }
 0x246   :  { %s519_s27 = scalar_lea.vmem %s292_s2, 64  ;;  %p524_p1 = scmp.lt.s32.totalorder %s292_s2, %s292_s2 }
 0x247   :  { %p520_p0 = scmp.ne.s32.totalorder %s292_s2, %s519_s27  ;;  %p525_p2 = scmp.lt.s32.totalorder %s519_s27, %s519_s27 }
 0x249   :  { %p526_p3 = por %p525_p2, %p524_p1 }
 0x24b   :  { %p527_p4 = pnand %p526_p3, %p520_p0 }
 0x24e   :  { %v364_v58 = vpop.eup %363 }
 0x24f   :  { %343 = vpush %v364_v58 }
 0x280   :  { %s344_s26 = spop %343 }
 0x281   :  { %v236_v61 = vstv %s344_s26 }
 0x282   :  { %v237_v62 = vmul.f32 %v236_v61, %v235_v60 }
 0x284   :  { %238 = vst [vmem:[#allocation14] sm:$0xf] %v237_v62 }
 0x285   :  { %530 = shalt.err (!%p527_p4)
}
 0x286   :  { %s531_s3 = scalar_lea.hbm %s798_s9, 64 }
 0x287   :  { %p532_p5 = scmp.ne.s32.totalorder %s798_s9, %s531_s3  ;;  %p535_p6 = scmp.lt.u32.totalorder %s531_s3, %s798_s9 }
 0x289   :  { %p537_p7 = pnand %p535_p6, %p532_p5 }
 0x28b   :  { %540 = shalt.err (!%p537_p7)
}
 0x28c   :  { %294 = dma.vmem_to_hbm [thread:$0]  %s292_s2, 64, %s798_s9, [#allocation13]  }
 0x28d   :  { %545 = dma.done.wait [#allocation4], 256  }
 0x28e   :  { %546 = vsyncadd [#allocation4], 4294967040 }
 0x28f   :  { %547 = dma.done.wait [#allocation10], 512  }
 0x290   :  { %548 = vsyncadd [#allocation10], 4294966784 }
 0x291   :  { %549 = dma.done.wait [#allocation13], 128  }
 0x292   :  { %550 = vsyncadd [#allocation13], 4294967168 }
 0x293   :  { %310 = vsyncpa [#allocation3], 1 }
 0x294   :  { %311 = vsyncpa [#allocation6], 1 }
 0x295   :  { %312 = vsyncpa [#allocation4], 1 }
 0x296   :  { %313 = vsyncpa [#allocation10], 1 }
 0x297   :  { %314 = vsyncpa [#allocation13], 1 }

</bundles_post_ra>
